<compile_context>
chip_gen: v5e
topology: v5e:2x2
jax: 0.10.0
libtpu: 0.0.40
codegen_flags: <defaults>
</compile_context>

<pallas_src>
import math
import functools

import jax
import jax.numpy as jnp
from jax import lax
from jax.experimental import pallas as pl
from jax.experimental.pallas import tpu as pltpu


def _round_up(x: int, m: int) -> int:
    return -(-x // m) * m


# ----------------------------- kernels ------------------------------------


def _cl_kernel_acc(scale_ref, x_ref, w_ref, b_ref, o_ref, acc_ref,
                   *, compute_dtype):
    """Variant with f32 VMEM accumulator (non-f32 output dtypes).

    scale_ref: (1,) f32 SMEM  -> [alpha]   (1.0 when bits >= 16)
    x_ref:     (tm, tk) compute_dtype activation tile
    w_ref:     (tk, tn) stored quantized weight tile (int8 / bf16 / f32)
    b_ref:     (1, tn)  f32 bias tile
    o_ref:     (tm, tn) output tile
    acc_ref:   (tm, tn) f32 accumulator scratch
    """
    @pl.when(pl.program_id(2) == 0)
    def _init():
        acc_ref[...] = jnp.zeros_like(acc_ref)

    acc_ref[...] += jnp.dot(x_ref[...], w_ref[...].astype(compute_dtype),
                            preferred_element_type=jnp.float32)

    @pl.when(pl.program_id(2) == pl.num_programs(2) - 1)
    def _finalize():
        o_ref[...] = (acc_ref[...] * scale_ref[0] + b_ref[...]).astype(o_ref.dtype)


def _cl_kernel_inplace(scale_ref, x_ref, w_ref, b_ref, o_ref, *, compute_dtype):
    """Variant accumulating directly into the resident f32 output block."""
    @pl.when(pl.program_id(2) == 0)
    def _init():
        o_ref[...] = jnp.zeros_like(o_ref)

    o_ref[...] += jnp.dot(x_ref[...], w_ref[...].astype(compute_dtype),
                          preferred_element_type=jnp.float32)

    @pl.when(pl.program_id(2) == pl.num_programs(2) - 1)
    def _finalize():
        o_ref[...] = o_ref[...] * scale_ref[0] + b_ref[...]


# ------------------------ one-time weight prep -----------------------------


def prepare_compressed_linear(weight, mask, bias, *, bits, tn=None, tk=None):
    """One-time, cacheable preprocessing of a CompressedLinear weight.

    weight/mask: (N, K), bias: (N,).  Returns a params dict consumed by
    compressed_linear_apply.  Runs mask fold, the global alpha reduction,
    quantization, the (N,K)->(K,N) transpose and padding exactly once.
    """
    N, K = weight.shape
    w_pruned = (weight * mask).astype(jnp.float32)

    if bits >= 16:
        alpha = jnp.float32(1.0)
        w_store = w_pruned                      # unquantized
        compute_dtype = jnp.float32
    else:
        if bits == 1:
            qn, qp = -1.0, 1.0
        else:
            qn, qp = float(-(2 ** (bits - 1))), float(2 ** (bits - 1) - 1)
        abs_mean = jnp.mean(jnp.abs(w_pruned))  # GLOBAL mean (incl. pruned zeros)
        alpha = 2.0 * abs_mean / math.sqrt(qp) if qp > 0 else abs_mean
        alpha = jnp.maximum(alpha, jnp.float32(1e-8)).astype(jnp.float32)
        w_int = jnp.clip(jnp.round(w_pruned / alpha), qn, qp)   # integer levels (f32)
        if bits <= 8:
            store_dtype, compute_dtype = jnp.int8, jnp.bfloat16     # exact in int8/bf16
        elif bits == 9:
            store_dtype, compute_dtype = jnp.bfloat16, jnp.bfloat16  # |level|<=256 exact
        else:  # 10..15: levels exceed bf16 exact-integer range -> keep f32 end-to-end
            store_dtype, compute_dtype = jnp.float32, jnp.float32
        w_store = w_int.astype(store_dtype)

    # Tile sizes along N / K (M tile is picked per-call from the batch size).
    tn = tn or min(512, _round_up(N, 128))
    tk = tk or (K if K <= 1024 else 1024)
    Np, Kp = _round_up(N, tn), _round_up(K, tk)

    wt = jnp.transpose(w_store)                 # (K, N): plain (M,K)@(K,N) contraction
    if (Kp, Np) != (K, N):
        wt = jnp.pad(wt, ((0, Kp - K), (0, Np - N)))
    b2d = bias.astype(jnp.float32).reshape(1, N)
    if Np != N:
        b2d = jnp.pad(b2d, ((0, 0), (0, Np - N)))
    scale = jnp.reshape(alpha, (1,)).astype(jnp.float32)   # (1,) -> SMEM

    return dict(wt=wt, bias=b2d, scale=scale, tn=tn, tk=tk,
                N=N, K=K, Kp=Kp, Np=Np, compute_dtype=compute_dtype, bits=bits)


# ------------------------------ forward ------------------------------------


def compressed_linear_apply(x, params, *, tm=None):
    """x: (..., K) -> (..., N) using pre-quantized params."""
    *lead, K = x.shape
    assert K == params["K"], (x.shape, params["K"])
    compute_dtype = params["compute_dtype"]
    tn, tk = params["tn"], params["tk"]
    Kp, Np, N = params["Kp"], params["Np"], params["N"]
    wt, b2d, scale = params["wt"], params["bias"], params["scale"]

    M = 1
    for d in lead:
        M *= d
    out_dtype = x.dtype
    x2d = x.reshape(M, K).astype(compute_dtype)   # cast once, outside the kernel

    sub = 16 if compute_dtype == jnp.bfloat16 else 8
    # Small-M (decode/GEMV): only round up to the sublane multiple, not 128.
    # For large M / v6e, callers can push tm (and tn) to 1024.
    tm = tm or min(512, _round_up(M, sub))
    Mp = _round_up(M, tm)
    if (Mp, Kp) != (M, K):
        x2d = jnp.pad(x2d, ((0, Mp - M), (0, Kp - K)))

    grid = (Mp // tm, Np // tn, Kp // tk)
    use_acc_scratch = out_dtype != jnp.float32

    if use_acc_scratch:
        kernel = functools.partial(_cl_kernel_acc, compute_dtype=compute_dtype)
        scratch_shapes = [pltpu.VMEM((tm, tn), jnp.float32)]
    else:
        kernel = functools.partial(_cl_kernel_inplace, compute_dtype=compute_dtype)
        scratch_shapes = []

    # Size VMEM limit from the actual working set; only override the 32 MiB
    # default when we genuinely need more (v7x has a 64 MiB/TC ceiling).
    x_b = jnp.dtype(compute_dtype).itemsize
    w_b = jnp.dtype(wt.dtype).itemsize
    o_b = jnp.dtype(out_dtype).itemsize
    vmem_need = 2 * (tm * tk * x_b + tk * tn * w_b + tn * 4 + tm * tn * o_b)
    if use_acc_scratch:
        vmem_need += tm * tn * 4
    cp_kwargs = {"dimension_semantics": ("parallel", "parallel", "arbitrary")}
    if vmem_need > 24 * 1024 * 1024:
        cp_kwargs["vmem_limit_bytes"] = min(int(vmem_need * 1.25) + (2 << 20),
                                            112 * 1024 * 1024)

    out = pl.pallas_call(
        kernel,
        out_shape=jax.ShapeDtypeStruct((Mp, Np), out_dtype),
        grid_spec=pltpu.PrefetchScalarGridSpec(
            num_scalar_prefetch=0,
            grid=grid,
            in_specs=[
                pl.BlockSpec(memory_space=pltpu.MemorySpace.SMEM),   # alpha scalar
                pl.BlockSpec((tm, tk), lambda i, j, k: (i, k)),      # x tile
                pl.BlockSpec((tk, tn), lambda i, j, k: (k, j)),      # quantized w^T tile
                pl.BlockSpec((1, tn), lambda i, j, k: (0, j)),       # bias tile
            ],
            out_specs=pl.BlockSpec((tm, tn), lambda i, j, k: (i, j)),
            scratch_shapes=scratch_shapes,
        ),
        compiler_params=pltpu.CompilerParams(**cp_kwargs),
    )(scale, x2d, wt, b2d)

    return out[:M, :N].reshape(*lead, N)


def compressed_linear(x, weight, mask, bias, *, bits, tm=None, tn=None, tk=None):
    """Convenience wrapper: prep + apply in one call (prep is cacheable)."""
    params = prepare_compressed_linear(weight, mask, bias, bits=bits, tn=tn, tk=tk)
    return compressed_linear_apply(x, params, tm=tm)


# --------------------------- reference bits --------------------------------


def make_pruning_mask(weight, pruning_ratio):
    """Same semantics as CompressedLinear.__init__ (init-time, not in kernel)."""
    if pruning_ratio <= 0:
        return jnp.ones_like(weight)
    flat = jnp.abs(weight).flatten()
    k = int(flat.shape[0] * pruning_ratio)
    if k <= 0:
        return jnp.ones_like(weight)
    threshold = jnp.sort(flat)[k - 1]            # max of the k smallest
    return (jnp.abs(weight) > threshold).astype(jnp.float32)


def reference_forward(x, weight, mask, bias, *, bits):
    """Pure-JAX f32 reference mirroring the PyTorch module."""
    w = weight * mask
    if bits < 16:
        if bits == 1:
            qn, qp = -1.0, 1.0
        else:
            qn, qp = float(-(2 ** (bits - 1))), float(2 ** (bits - 1) - 1)
        alpha = (2.0 * jnp.mean(jnp.abs(w)) / math.sqrt(qp)
                 if qp > 0 else jnp.mean(jnp.abs(w)))
        alpha = jnp.maximum(alpha, 1e-8)
        w = jnp.clip(jnp.round(w / alpha), qn, qp) * alpha
    return jnp.einsum("...k,nk->...n", x, w,
                      precision=lax.Precision.HIGHEST) + bias


if __name__ == "__main__":
    # Small shapes consistent with Linear(in_features=32, out_features=48).
    batch, seq, in_features, out_features = 2, 8, 32, 48
    bits = 8
    pruning_ratio = 0.5

    key = jax.random.PRNGKey(0)
    kx, kw, kb = jax.random.split(key, 3)

    bound = 1.0 / math.sqrt(in_features)
    weight = jax.random.uniform(kw, (out_features, in_features),
                                minval=-bound, maxval=bound, dtype=jnp.float32)
    bias = jax.random.uniform(kb, (out_features,),
                              minval=-bound, maxval=bound, dtype=jnp.float32)
    mask = make_pruning_mask(weight, pruning_ratio)

    x = jax.random.normal(kx, (batch, seq, in_features), dtype=jnp.float32)

    # One-time (cacheable) weight prep, then the Pallas forward.
    params = prepare_compressed_linear(weight, mask, bias, bits=bits)
    out = compressed_linear_apply(x, params)
    out = jax.block_until_ready(out)

    ref = reference_forward(x, weight, mask, bias, bits=bits)
    assert out.shape == (batch, seq, out_features), out.shape
    # bf16 MXU activations -> ~1e-3 relative error vs exact f32 reference.
    assert jnp.allclose(out, ref, atol=3e-2, rtol=3e-2), (
        float(jnp.max(jnp.abs(out - ref))))

    print("KERNEL_OK")
</pallas_src>

<mosaic_0001>
module attributes {stable_mosaic.version = 11 : i64} {
  func.func @_cl_kernel_inplace(%arg0: i32, %arg1: i32, %arg2: i32, %arg3: memref<1xf32, #tpu.memory_space<smem>>, %arg4: memref<16x32xbf16, #tpu.memory_space<vmem>>, %arg5: memref<32x128xi8, #tpu.memory_space<vmem>>, %arg6: memref<1x128xf32, #tpu.memory_space<vmem>>, %arg7: memref<16x128xf32, #tpu.memory_space<vmem>>) attributes {dimension_semantics = [#tpu.dimension_semantics<parallel>, #tpu.dimension_semantics<parallel>, #tpu.dimension_semantics<arbitrary>], iteration_bounds = array<i64: 1, 1, 1>, scalar_prefetch = 0 : i64, scratch_operands = 0 : i64, tpu.core_type = #tpu.core_type<tc>, window_params = [{transform_indices = @transform_0, window_bounds = array<i64: 1>}, {transform_indices = @transform_1, window_bounds = array<i64: 16, 32>}, {transform_indices = @transform_2, window_bounds = array<i64: 32, 128>}, {transform_indices = @transform_3, window_bounds = array<i64: 1, 128>}, {transform_indices = @transform_4, window_bounds = array<i64: 16, 128>}]} {
    %c0_i32 = arith.constant 0 : i32
    %0 = arith.cmpi eq, %arg2, %c0_i32 : i32
    %1 = arith.extui %0 : i1 to i32
    %c0_i32_0 = arith.constant 0 : i32
    %2 = arith.cmpi ne, %1, %c0_i32_0 : i32
    scf.if %2 {
      %cst_10 = arith.constant 0.000000e+00 : f32
      %13 = vector.broadcast %cst_10 : f32 to vector<16x128xf32>
      %c0_11 = arith.constant 0 : index
      %c0_12 = arith.constant 0 : index
      %14 = vector.load %arg7[%c0_11, %c0_12] : memref<16x128xf32, #tpu.memory_space<vmem>>, vector<16x128xf32>
      tpu.vector_store %arg7[%c0_11, %c0_12], %13 {strides = array<i32>} : memref<16x128xf32, #tpu.memory_space<vmem>>, vector<16x128xf32>,
    } else {
    }
    %c0 = arith.constant 0 : index
    %c0_1 = arith.constant 0 : index
    %3 = vector.load %arg7[%c0, %c0_1] : memref<16x128xf32, #tpu.memory_space<vmem>>, vector<16x128xf32>
    %c0_2 = arith.constant 0 : index
    %c0_3 = arith.constant 0 : index
    %4 = vector.load %arg4[%c0_2, %c0_3] : memref<16x32xbf16, #tpu.memory_space<vmem>>, vector<16x32xbf16>
    %c0_4 = arith.constant 0 : index
    %c0_5 = arith.constant 0 : index
    %5 = vector.load %arg5[%c0_4, %c0_5] : memref<32x128xi8, #tpu.memory_space<vmem>>, vector<32x128xi8>
    %6 = arith.sitofp %5 : vector<32x128xi8> to vector<32x128xbf16>
    %cst = arith.constant dense<0.000000e+00> : vector<16x128xf32>
    %7 = tpu.matmul %4, %6, %cst {dimension_numbers = #tpu.dot_dimension_numbers<[1], [0], [0], [1], [0, 0, 1, 1], [], []>} : vector<16x32xbf16>, vector<32x128xbf16>, vector<16x128xf32> -> vector<16x128xf32>
    %8 = arith.addf %3, %7 : vector<16x128xf32>
    %c0_6 = arith.constant 0 : index
    %c0_7 = arith.constant 0 : index
    %9 = vector.load %arg7[%c0_6, %c0_7] : memref<16x128xf32, #tpu.memory_space<vmem>>, vector<16x128xf32>
    tpu.vector_store %arg7[%c0_6, %c0_7], %8 {strides = array<i32>} : memref<16x128xf32, #tpu.memory_space<vmem>>, vector<16x128xf32>,
    %c0_i32_8 = arith.constant 0 : i32
    %10 = arith.cmpi eq, %arg2, %c0_i32_8 : i32
    %11 = arith.extui %10 : i1 to i32
    %c0_i32_9 = arith.constant 0 : i32
    %12 = arith.cmpi ne, %11, %c0_i32_9 : i32
    scf.if %12 {
      %c0_10 = arith.constant 0 : index
      %c0_11 = arith.constant 0 : index
      %13 = vector.load %arg7[%c0_10, %c0_11] : memref<16x128xf32, #tpu.memory_space<vmem>>, vector<16x128xf32>
      %c0_12 = arith.constant 0 : index
      %14 = memref.load %arg3[%c0_12] : memref<1xf32, #tpu.memory_space<smem>>
      %15 = vector.broadcast %14 : f32 to vector<16x128xf32>
      %16 = arith.mulf %13, %15 : vector<16x128xf32>
      %c0_13 = arith.constant 0 : index
      %c0_14 = arith.constant 0 : index
      %17 = vector.load %arg6[%c0_13, %c0_14] : memref<1x128xf32, #tpu.memory_space<vmem>>, vector<1x128xf32>
      %18 = vector.broadcast %17 : vector<1x128xf32> to vector<16x128xf32>
      %19 = arith.addf %16, %18 : vector<16x128xf32>
      %c0_15 = arith.constant 0 : index
      %c0_16 = arith.constant 0 : index
      %20 = vector.load %arg7[%c0_15, %c0_16] : memref<16x128xf32, #tpu.memory_space<vmem>>, vector<16x128xf32>
      tpu.vector_store %arg7[%c0_15, %c0_16], %19 {strides = array<i32>} : memref<16x128xf32, #tpu.memory_space<vmem>>, vector<16x128xf32>,
    } else {
    }
    return
  }
  func.func @transform_0(%arg0: i32, %arg1: i32, %arg2: i32) -> i32 {
    %c0_i32 = arith.constant 0 : i32
    %c0_i32_0 = arith.constant 0 : i32
    return %c0_i32 : i32
  }
  func.func @transform_1(%arg0: i32, %arg1: i32, %arg2: i32) -> (i32, i32) {
    %c0_i32 = arith.constant 0 : i32
    return %arg0, %arg2 : i32, i32
  }
  func.func @transform_2(%arg0: i32, %arg1: i32, %arg2: i32) -> (i32, i32) {
    %c0_i32 = arith.constant 0 : i32
    return %arg2, %arg1 : i32, i32
  }
  func.func @transform_3(%arg0: i32, %arg1: i32, %arg2: i32) -> (i32, i32) {
    %c0_i32 = arith.constant 0 : i32
    %c0_i32_0 = arith.constant 0 : i32
    return %c0_i32, %arg1 : i32, i32
  }
  func.func @transform_4(%arg0: i32, %arg1: i32, %arg2: i32) -> (i32, i32) {
    %c0_i32 = arith.constant 0 : i32
    return %arg0, %arg1 : i32, i32
  }
}

</mosaic_0001>

<bundles_post_ra>
// kernel: tpu_custom_call.1
= control target key start
LH: loop header
LB: loop body
LE: loop exit
PB: predicated region body
PF: predicated region fallthrough
CT: control target
= control target key end

     0   :  { %10 = vsyncpa [#allocation4], 0  ;;  %s275_s0 = inlined_call_operand.<no memory space> [shape: f32[1], index: 0, kind: input, shape index: {}]   ;;  %s276_s1 = inlined_call_operand.hbm [shape: bf16[16,32], index: 1, kind: input, shape index: {}]   ;;  %s277_s2 = inlined_call_operand.hbm [shape: s8[32,128], index: 2, kind: input, shape index: {}]   ;;  %s278_s3 = inlined_call_operand.vmem [shape: f32[1,128], index: 3, kind: input, shape index: {}]   ;;  %s279_s4 = inlined_call_operand.hbm [shape: f32[16,128], index: 4, kind: output, shape index: {}]  }
   0x1   :  { %11 = vsyncpa [#allocation7], 0 }
   0x2   :  { %12 = vsyncpa [#allocation5], 0  ;;  %s19_s17 = sshll.u32 %s276_s1, 4  ;;  %s228_s18 = smov [#allocation3]   ;;  %s20_s17 = int_to_ptr.hbm [resolvable:$true] %s19_s17 }
   0x3   :  { %s21_s19 = sshll.u32 %s228_s18, 4  ;;  %s33_s22 = sshll.u32 %s277_s2, 4  ;;  %s22_s19 = int_to_ptr.vmem [resolvable:$true] %s21_s19  ;;  %s34_s22 = int_to_ptr.hbm [resolvable:$true] %s33_s22 }
   0x4   :  { %s229_s23 = smov 64   ;;  %s230_s24 = smov 4  }
   0x5   :  { %27 = dma.hbm_to_vmem [thread:$0]  %s20_s17, 128, %s22_s19, [#allocation4], %s229_s23, %s229_s23, %s230_s24  }
   0x6   :  { %s231_s25 = smov [#allocation6]  }
   0x7   :  { %s35_s26 = sshll.u32 %s231_s25, 4  ;;  %s36_s26 = int_to_ptr.vmem [resolvable:$true] %s35_s26 }
   0x8   :  { %38 = dma.hbm_to_vmem [thread:$0]  %s34_s22, 128, %s36_s26, [#allocation7]  }
   0x9   :  { %222 = dma.done.wait [#allocation4], 128  }
   0xa   :  { %223 = vsyncadd [#allocation4], 4294967168 }
   0xb   :  { %224 = dma.done.wait [#allocation7], 128  }
   0xc   :  { %225 = vsyncadd [#allocation7], 4294967168  ;;  %v60_v0 = vld [vmem:[#allocation6] sm:$0xff]  ;;  %v140_v11 = vld [vmem:[#allocation3] sm:$0xff]  ;;  %vm76_vm0 = vcmask 261120   ;;  %v104_v13 = vstv %s275_s0  ;;  %s232_s29 = smov [#allocation8]  }
   0xd   :  { %v63_v1 = vunpack.c.2.s8 %v60_v0  ;;  %v64_v2 = vunpack.c.3.s8 %v60_v0  ;;  %v61_v3 = vunpack.c.0.s8 %v60_v0  ;;  %v62_v4 = vunpack.c.1.s8 %v60_v0  ;;  %v149_v14 = vld [vmem:[%s278_s3] ss:$0 sm:$0xff]  ;;  %s119_s30 = sshll.u32 %s232_s29, 4  ;;  %s121_s7 = sshll.u32 %s279_s4, 4  ;;  %s120_s30 = int_to_ptr.vmem [resolvable:$true] %s119_s30  ;;  %s122_s7 = int_to_ptr.hbm [resolvable:$true] %s121_s7 }
   0xe   :  { %s233_s0 = smov 128   ;;  %s234_s8 = smov 8  }
   0xf   :  { %v67_v5 = vcvt.s32.f32 %v63_v1  ;;  %v68_v6 = vcvt.s32.f32 %v64_v2  ;;  %v65_v7 = vcvt.s32.f32 %v61_v3  ;;  %v66_v8 = vcvt.s32.f32 %v62_v4 }
  0x11   :  { %v70_v9 = vpack.c.bf16 %v68_v6, %v67_v5  ;;  %v69_v10 = vpack.c.bf16 %v66_v8, %v65_v7 }
  0x13   :  { %86 = vmatpush.bf16.msra.mxu0 %v70_v9 }
  0x17   :  { %87 = vmatpush.bf16.msra.mxu0 %v69_v10 }
  0x1a   :  { %139 = vmatmul.msk.bf16.vlgmr.msra.gmra.mxu0 %vm76_vm0, %v140_v11 }
  0x97   :  { %v89_v12 = vpop.f32.mrf.mxu0 }
  0x98   :  { %v105_v15 = vmul.f32 %v104_v13, %v89_v12 }
  0x9a   :  { %v111_v16 = vadd.f32 %v149_v14, %v105_v15 }
  0x9c   :  { %113 = vst [vmem:[#allocation8] sm:$0xff] %v111_v16 }
  0x9f   :  { %v91_v17 = vpop.f32.mrf.mxu0 }
  0xa0   :  { %v106_v18 = vmul.f32 %v104_v13, %v91_v17 }
  0xa2   :  { %v112_v19 = vadd.f32 %v149_v14, %v106_v18 }
  0xa4   :  { %114 = vst [vmem:[#allocation8 + $0x8] sm:$0xff] %v112_v19 }
  0xa5   :  { %127 = dma.vmem_to_hbm [thread:$0]  %s120_s30, 256, %s122_s7, [#allocation5], %s233_s0, %s233_s0, %s234_s8  }
  0xa6   :  { %226 = dma.done.wait [#allocation5], 256  }
  0xa7   :  { %227 = vsyncadd [#allocation5], 4294967040 }
  0xa8   :  { %132 = vsyncpa [#allocation4], 1 }
  0xa9   :  { %133 = vsyncpa [#allocation7], 1 }
  0xaa   :  { %134 = vsyncpa [#allocation5], 1 }

</bundles_post_ra>
